<compile_context>
chip_gen: v6e
topology: v6e:2x2x1
jax: 0.10.0
libtpu: 0.0.40
codegen_flags: <defaults>
</compile_context>

<pallas_src>
import functools

import jax
import jax.numpy as jnp
from jax.experimental import pallas as pl
from jax.experimental.pallas import tpu as pltpu


_TINY_BYTES = 256 * 1024                 # below this, plain JAX beats a 1-step kernel
_PIPELINE_VMEM_BUDGET = 12 * 1024 * 1024  # double-buffered in+out blocks, all streams
_MAX_LANES = 1024                         # target folded lane width (multiple of 128)


# --------------------------------------------------------------------------
# Kernel factory: n independent per-feature affines, y_k = a_k * v_k + b_k.
# Pure VPU FMA, strictly memory-bound; coefficients are kept in f32.
# --------------------------------------------------------------------------
def _make_affine_kernel(n_streams: int):
    def kernel(*refs):
        ins, outs = refs[: 3 * n_streams], refs[3 * n_streams:]
        for k in range(n_streams):
            v_ref, a_ref, b_ref = ins[3 * k], ins[3 * k + 1], ins[3 * k + 2]
            y = v_ref[...].astype(jnp.float32) * a_ref[...] + b_ref[...]
            outs[k][...] = y.astype(outs[k].dtype)
    return kernel


def _choose_fold(n_rows: int, d: int, max_lanes: int = _MAX_LANES):
    """Pick fold factor f so width = d*f is a multiple of 128 (lane-dense).

    Prefers the largest f that divides n_rows (free reshape, no padding);
    otherwise returns the widest valid f plus a tiny row pad (< f)."""
    if d % 128 == 0:
        return 1, 0
    max_f = max(max_lanes // d, 1)
    valid = [f for f in range(max_f, 0, -1) if (d * f) % 128 == 0]
    if not valid:
        return 1, 0                       # d itself becomes the (full-extent) lane dim
    for f in valid:                       # widest lane-dense fold with no padding
        if n_rows % f == 0:
            return f, 0
    f = valid[0]                          # widest fold; pad a handful of rows (< f)
    return f, (-n_rows) % f


def _apply_affine_multi(streams, *, force_pallas: bool = False):
    """streams: list of (v, a, b) with identical v.shape/dtype.

    Returns [a_k * v_k + b_k for each stream] computed in one fused,
    lane-dense, byte-budgeted Pallas call (or plain JAX for tiny inputs)."""
    v0 = streams[0][0]
    B, D = v0.shape
    dtype = v0.dtype
    n = len(streams)
    for (v, _, _) in streams:
        assert v.shape == (B, D) and v.dtype == dtype

    total_bytes = B * D * dtype.itemsize
    if total_bytes <= _TINY_BYTES and not force_pallas:
        # 1-step pallas_call is pure launch/DMA-prologue overhead at this size.
        return [
            (v.astype(jnp.float32) * a[None, :].astype(jnp.float32)
             + b[None, :].astype(jnp.float32)).astype(dtype)
            for (v, a, b) in streams
        ]

    # ---- lane-dense fold: view (B, D) as (rows, D*f) with D*f % 128 == 0 ----
    f, pad_rows = _choose_fold(B, D)
    B_pad = B + pad_rows
    rows, width = B_pad // f, D * f

    vs, coeffs = [], []
    for (v, a, b) in streams:
        if pad_rows:
            v = jnp.pad(v, ((0, pad_rows), (0, 0)))   # < f extra rows only
        vs.append(v.reshape(rows, width))
        coeffs.append((
            jnp.tile(a.reshape(1, D).astype(jnp.float32), (1, f)),
            jnp.tile(b.reshape(1, D).astype(jnp.float32), (1, f)),
        ))

    # ---- byte-budget tile selection (per stream: in + out, double-buffered) ----
    block_bytes = _PIPELINE_VMEM_BUDGET // (4 * n)
    row_bytes = width * dtype.itemsize
    if rows * row_bytes <= block_bytes:
        tile_rows = rows                  # full-extent block: 1 step, no padding
    else:
        tile_rows = max((block_bytes // row_bytes) // 8 * 8, 8)
        if rows % tile_rows:
            # Prefer a tile that divides rows exactly (no partial tail block),
            # but don't shrink below half the budgeted tile.
            for t in range(tile_rows, max(tile_rows // 2, 8) - 1, -8):
                if rows % t == 0:
                    tile_rows = t
                    break
    grid = (pl.cdiv(rows, tile_rows),)    # ragged tail handled as a partial block

    in_specs, args = [], []
    for k in range(n):
        in_specs += [
            pl.BlockSpec((tile_rows, width), lambda i: (i, 0)),   # data, row-tiled
            pl.BlockSpec((1, width), lambda i: (0, 0)),           # a, resident
            pl.BlockSpec((1, width), lambda i: (0, 0)),           # b, resident
        ]
        args += [vs[k], coeffs[k][0], coeffs[k][1]]
    out_specs = [pl.BlockSpec((tile_rows, width), lambda i: (i, 0)) for _ in range(n)]
    out_shape = [jax.ShapeDtypeStruct((rows, width), dtype) for _ in range(n)]

    outs = pl.pallas_call(
        _make_affine_kernel(n),
        out_shape=out_shape,
        grid=grid,
        in_specs=in_specs,
        out_specs=out_specs,
        compiler_params=pltpu.CompilerParams(
            dimension_semantics=("parallel",)),
    )(*args)
    if not isinstance(outs, (tuple, list)):
        outs = (outs,)

    results = []
    for o in outs:
        o = o.reshape(B_pad, D)
        if pad_rows:
            o = o[:B]
        results.append(o)
    return results


# --------------------------------------------------------------------------
# Forward wrapper (mirrors ProgramComponent.forward semantics).
# --------------------------------------------------------------------------
def _safe_range(lim):
    """Guard degenerate limits (max == min) without flipping the sign."""
    r = lim[1] - lim[0]
    eps = jnp.float32(1e-12)
    return jnp.where(jnp.abs(r) < eps, jnp.where(r < 0, -eps, eps), r)


def _forward(x, s_in, limits_x, limits_s, limits_Y, *,
             denormalize_out: bool = True, force_pallas: bool = False):
    """Returns (Y, s_out).

    Identity placeholder program: Y_n = normalize(x), s_out_n = normalize(s_in).
    denormalize_out=True  -> Y denormalized with limits_Y, s_out with limits_s.
    denormalize_out=False -> normalized outputs returned.
    """
    # TODO(synk): ProgramComponent.forward is abstract (`pass`) in the reference;
    # the learned "program" between normalize/denormalize is an identity here.
    limits_x = limits_x.astype(jnp.float32)
    limits_s = limits_s.astype(jnp.float32)
    limits_Y = limits_Y.astype(jnp.float32)

    x_min, x_rng = limits_x[0], _safe_range(limits_x)
    s_min, s_rng = limits_s[0], _safe_range(limits_s)
    y_min, y_rng = limits_Y[0], _safe_range(limits_Y)

    if denormalize_out:
        # denorm(limits_Y, norm(limits_x, x)) == (x - x_min) * y_rng/x_rng + y_min
        a_y = y_rng / x_rng
        b_y = y_min - x_min * a_y
        (Y,) = _apply_affine_multi([(x, a_y, b_y)], force_pallas=force_pallas)
        # denorm(limits_s, norm(limits_s, s_in)) is mathematically the identity:
        # skip the kernel and the HBM round-trip (s_out aliases s_in; JAX arrays
        # are immutable so this is safe).
        s_out = s_in
    else:
        a_x = 2.0 / x_rng
        b_x = -2.0 * x_min / x_rng - 1.0
        a_s = 2.0 / s_rng
        b_s = -2.0 * s_min / s_rng - 1.0
        if x.shape == s_in.shape and x.dtype == s_in.dtype:
            # Fuse both affines into a single pallas_call (one pipeline).
            Y, s_out = _apply_affine_multi(
                [(x, a_x, b_x), (s_in, a_s, b_s)], force_pallas=force_pallas)
        else:
            (Y,) = _apply_affine_multi([(x, a_x, b_x)], force_pallas=force_pallas)
            (s_out,) = _apply_affine_multi([(s_in, a_s, b_s)],
                                           force_pallas=force_pallas)
    return Y, s_out


program_component_forward = jax.jit(
    _forward, static_argnames=("denormalize_out", "force_pallas"))


# --------------------------------------------------------------------------
# Pure-JAX reference (original two-step normalize / denormalize math).
# --------------------------------------------------------------------------
def _reference(x, s_in, limits_x, limits_s, limits_Y, denormalize_out=True):
    def norm(v, lim):
        return 2.0 * (v - lim[0:1]) / (lim[1:2] - lim[0:1]) - 1.0

    def denorm(v_n, lim):
        return 0.5 * (v_n + 1.0) * (lim[1:2] - lim[0:1]) + lim[0:1]

    x_n = norm(x, limits_x)
    s_n = norm(s_in, limits_s)
    y_n, s_out_n = x_n, s_n                       # identity placeholder program
    if denormalize_out:
        return denorm(y_n, limits_Y), denorm(s_out_n, limits_s)
    return y_n, s_out_n


if __name__ == "__main__":
    key = jax.random.PRNGKey(0)
    kx, ks, kx2, ks2, kx3, ks3 = jax.random.split(key, 6)

    input_size = 32
    state_size = 32

    # Deterministic limits: [min; max] per feature, min < max everywhere.
    limits_x = jnp.stack([
        -1.0 - 0.1 * jnp.arange(input_size, dtype=jnp.float32),
        2.0 + 0.1 * jnp.arange(input_size, dtype=jnp.float32),
    ])
    limits_s = jnp.stack([
        -2.0 - 0.05 * jnp.arange(state_size, dtype=jnp.float32),
        1.5 + 0.05 * jnp.arange(state_size, dtype=jnp.float32),
    ])
    limits_Y = jnp.stack([
        -3.0 - 0.2 * jnp.arange(input_size, dtype=jnp.float32),
        3.0 + 0.2 * jnp.arange(input_size, dtype=jnp.float32),
    ])

    def check(B, kxa, ksa, denorm, force):
        x = jax.random.normal(kxa, (B, input_size), dtype=jnp.float32)
        s = jax.random.normal(ksa, (B, state_size), dtype=jnp.float32)
        y, s_out = program_component_forward(
            x, s, limits_x, limits_s, limits_Y,
            denormalize_out=denorm, force_pallas=force)
        jax.block_until_ready((y, s_out))
        y_ref, s_ref = _reference(x, s, limits_x, limits_s, limits_Y, denorm)
        assert jnp.allclose(y, y_ref, atol=1e-4, rtol=1e-5), (B, denorm, force)
        assert jnp.allclose(s_out, s_ref, atol=1e-4, rtol=1e-5), (B, denorm, force)

    # Small shape through the Pallas path (single lane-folded full-extent block).
    check(8, kx, ks, True, True)
    # Small shape, normalized outputs: fused 2-stream Pallas kernel.
    check(8, kx, ks, False, True)
    # Small shape through the plain-JAX short-circuit path.
    check(8, kx, ks, True, False)
    # Awkward (prime) batch: lane-dense fold with only a few padded rows.
    check(4099, kx2, ks2, True, True)
    # Divisor-compatible fold, single ~1 MiB full-extent block (no padding).
    check(8200, kx2, ks2, True, False)
    # Large batch: multi-step grid with a ragged (partial) last block.
    check(40000, kx3, ks3, True, False)
    # Large batch, normalized outputs: fused 2-stream, multi-step grid.
    check(40000, kx3, ks3, False, False)

    print("KERNEL_OK")
</pallas_src>

<mosaic_0001>
module attributes {stable_mosaic.version = 11 : i64} {
  func.func @kernel(%arg0: i32, %arg1: memref<1x256xf32, #tpu.memory_space<vmem>>, %arg2: memref<1x256xf32, #tpu.memory_space<vmem>>, %arg3: memref<1x256xf32, #tpu.memory_space<vmem>>, %arg4: memref<1x256xf32, #tpu.memory_space<vmem>>) attributes {dimension_semantics = [#tpu.dimension_semantics<parallel>], iteration_bounds = array<i64: 1>, scalar_prefetch = 0 : i64, scratch_operands = 0 : i64, tpu.core_type = #tpu.core_type<tc>, window_params = [{transform_indices = @transform_0, window_bounds = array<i64: 1, 256>}, {pipeline_mode = #tpu.pipeline_mode<synchronous>, transform_indices = @transform_1, window_bounds = array<i64: 1, 256>}, {pipeline_mode = #tpu.pipeline_mode<synchronous>, transform_indices = @transform_2, window_bounds = array<i64: 1, 256>}, {transform_indices = @transform_3, window_bounds = array<i64: 1, 256>}]} {
    %c0 = arith.constant 0 : index
    %c0_0 = arith.constant 0 : index
    %0 = vector.load %arg1[%c0, %c0_0] : memref<1x256xf32, #tpu.memory_space<vmem>>, vector<1x256xf32>
    %c0_1 = arith.constant 0 : index
    %c0_2 = arith.constant 0 : index
    %1 = vector.load %arg2[%c0_1, %c0_2] : memref<1x256xf32, #tpu.memory_space<vmem>>, vector<1x256xf32>
    %2 = arith.mulf %0, %1 : vector<1x256xf32>
    %c0_3 = arith.constant 0 : index
    %c0_4 = arith.constant 0 : index
    %3 = vector.load %arg3[%c0_3, %c0_4] : memref<1x256xf32, #tpu.memory_space<vmem>>, vector<1x256xf32>
    %4 = arith.addf %2, %3 : vector<1x256xf32>
    %c0_5 = arith.constant 0 : index
    %c0_6 = arith.constant 0 : index
    %5 = vector.load %arg4[%c0_5, %c0_6] : memref<1x256xf32, #tpu.memory_space<vmem>>, vector<1x256xf32>
    tpu.vector_store %arg4[%c0_5, %c0_6], %4 {strides = array<i32>} : memref<1x256xf32, #tpu.memory_space<vmem>>, vector<1x256xf32>,
    return
  }
  func.func @transform_0(%arg0: i32) -> (i32, i32) {
    %c0_i32 = arith.constant 0 : i32
    %c0_i32_0 = arith.constant 0 : i32
    return %arg0, %c0_i32 : i32, i32
  }
  func.func @transform_1(%arg0: i32) -> (i32, i32) {
    %c0_i32 = arith.constant 0 : i32
    %c0_i32_0 = arith.constant 0 : i32
    %c0_i32_1 = arith.constant 0 : i32
    return %c0_i32, %c0_i32_0 : i32, i32
  }
  func.func @transform_2(%arg0: i32) -> (i32, i32) {
    %c0_i32 = arith.constant 0 : i32
    %c0_i32_0 = arith.constant 0 : i32
    %c0_i32_1 = arith.constant 0 : i32
    return %c0_i32, %c0_i32_0 : i32, i32
  }
  func.func @transform_3(%arg0: i32) -> (i32, i32) {
    %c0_i32 = arith.constant 0 : i32
    %c0_i32_0 = arith.constant 0 : i32
    return %arg0, %c0_i32 : i32, i32
  }
}

</mosaic_0001>

<bundles_post_ra>
// kernel: _forward.1
= control target key start
LH: loop header
LB: loop body
LE: loop exit
PB: predicated region body
PF: predicated region fallthrough
CT: control target
= control target key end

     0   :  { %v19_v0 = vlaneseq  ;;  %s60_s0 = inlined_call_operand.vmem [shape: f32[1,256], index: 0, kind: input, shape index: {}]   ;;  %s61_s1 = inlined_call_operand.vmem [shape: f32[1,256], index: 1, kind: input, shape index: {}]   ;;  %s62_s2 = inlined_call_operand.vmem [shape: f32[1,256], index: 2, kind: input, shape index: {}]   ;;  %s63_s3 = inlined_call_operand.vmem [shape: f32[1,256], index: 3, kind: output, shape index: {}]  }
   0x1   :  { %v14_v1 = vld [vmem:[%s60_s0] sm:$0x3] }
   0x2   :  { %v15_v2 = vld [vmem:[%s61_s1] sm:$0x3]  ;;  %vm21_vm0 = vcmp.lt.s32.totalorder %v19_v0, 256 }
   0x3   :  { %v17_v3 = vld [vmem:[%s62_s2] sm:$0x3]  ;;  %v16_v4 = vmul.f32 %v15_v2, %v14_v1 }
   0x5   :  { %v18_v5 = vadd.f32 %v17_v3, %v16_v4 }
   0x7   :  { %23 = vst.msk [vmem:[%s63_s3] sm:$0x3] %vm21_vm0, %v18_v5 }

</bundles_post_ra>
